<compile_context>
chip_gen: v7x
topology: tpu7x:2x2x1
jax: 0.10.0
libtpu: 0.0.40
codegen_flags: <defaults>
</compile_context>

<pallas_src>
import jax
import jax.numpy as jnp
from jax import lax
from jax.experimental import pallas as pl
from jax.experimental.pallas import tpu as pltpu

KERNEL_SIZES = (1, 2, 3, 4)
WIN = max(KERNEL_SIZES)                              # shared 4x4 tap window
MAX_PAD_LO = (WIN - 1) // 2                          # 1 (largest left/top pad)
MAX_PAD_HI = (WIN - 1) - MAX_PAD_LO                  # 2 (largest right/bottom)


def _fused_conv_kernel(p_ref, w_ref, b_ref, o_ref):
  """One im2col GEMM for all four convs: (HW,16*Cin)@(16*Cin,4d) + bias."""
  acc = jnp.dot(p_ref[0], w_ref[...], preferred_element_type=jnp.float32)
  o_ref[0] = (acc + b_ref[...]).astype(o_ref.dtype)


def _pack_weights(weights, cin, d):
  """Zero-embed each conv's (k,k,Cin,d) HWIO weights into one (16*Cin, 4d)."""
  cols = []
  for k, w in zip(KERNEL_SIZES, weights):
    start = MAX_PAD_LO - (k - 1) // 2      # tap offset inside the 4x4 window
    w_full = jnp.pad(w.astype(jnp.float32),
                     ((start, WIN - k - start),
                      (start, WIN - k - start),
                      (0, 0), (0, 0)))                 # (WIN, WIN, Cin, d)
    cols.append(w_full.reshape(WIN * WIN * cin, d))
  return jnp.concatenate(cols, axis=1)                 # (WIN*WIN*Cin, 4d)


def _build_patches(x_nchw):
  """im2col: (N,Cin,H,W) -> (N, H*W, WIN*WIN*Cin) with union 'same' padding."""
  N, Cin, H, W = x_nchw.shape
  x_nhwc = jnp.transpose(x_nchw, (0, 2, 3, 1)).astype(jnp.float32)
  x_pad = jnp.pad(x_nhwc, ((0, 0),
                           (MAX_PAD_LO, MAX_PAD_HI),
                           (MAX_PAD_LO, MAX_PAD_HI),
                           (0, 0)))
  taps = [x_pad[:, dh:dh + H, dw:dw + W, :]            # (N, H, W, Cin)
          for dh in range(WIN) for dw in range(WIN)]
  patches = jnp.concatenate(taps, axis=-1)             # (N, H, W, 16*Cin)
  return patches.reshape(N, H * W, WIN * WIN * Cin)


def conv_block(x_nchw, weights, biases):
  """weights[i]: (k,k,Cin,d) HWIO; biases[i]: (d,). Returns NCHW output."""
  N, Cin, H, W = x_nchw.shape
  d = weights[0].shape[-1]
  cout = 4 * d
  kdim = WIN * WIN * Cin
  M = H * W

  patches = _build_patches(x_nchw)                        # (N, M, kdim)
  w_packed = _pack_weights(weights, Cin, d)               # (kdim, cout)
  bias2d = jnp.concatenate(
      [b.astype(jnp.float32) for b in biases]).reshape(1, cout)

  cost = pl.CostEstimate(
      flops=2 * N * H * W * Cin * d * sum(k * k for k in KERNEL_SIZES),
      transcendentals=0,
      bytes_accessed=4 * (patches.size + w_packed.size + bias2d.size
                          + N * M * cout),
  )

  out = pl.pallas_call(
      _fused_conv_kernel,
      out_shape=jax.ShapeDtypeStruct((N, M, cout), jnp.float32),
      grid=(N,),
      in_specs=[
          pl.BlockSpec((1, M, kdim), lambda n: (n, 0, 0)),
          pl.BlockSpec((kdim, cout), lambda n: (0, 0)),
          pl.BlockSpec((1, cout), lambda n: (0, 0)),
      ],
      out_specs=pl.BlockSpec((1, M, cout), lambda n: (n, 0, 0)),
      compiler_params=pltpu.CompilerParams(
          dimension_semantics=("parallel",),
          vmem_limit_bytes=32 * 1024 * 1024,
      ),
      cost_estimate=cost,
  )(patches, w_packed, bias2d)

  # back to NCHW exactly like the PyTorch module
  return jnp.transpose(out.reshape(N, H, W, cout), (0, 3, 1, 2))


def reference_conv_block(x_nchw, weights, biases):
  """Pure-JAX reference with PyTorch 'same' padding (for validation)."""
  outs = []
  for k, w_hwio, b in zip(KERNEL_SIZES, weights, biases):
    pad_lo = (k - 1) // 2
    pad_hi = (k - 1) - pad_lo
    w_oihw = jnp.transpose(w_hwio, (3, 2, 0, 1))
    o = lax.conv_general_dilated(
        x_nchw.astype(jnp.float32), w_oihw.astype(jnp.float32),
        window_strides=(1, 1),
        padding=((pad_lo, pad_hi), (pad_lo, pad_hi)),
        dimension_numbers=("NCHW", "OIHW", "NCHW"))
    outs.append(o + b.reshape(1, -1, 1, 1))
  return jnp.concatenate(outs, axis=1)


if __name__ == "__main__":
  # Module config: input_dim=4, output_dim=32 -> each conv has d=8 out channels
  input_dim, output_dim = 4, 32
  d = output_dim // 4
  N, H, W = 2, 16, 16

  key = jax.random.PRNGKey(0)
  keys = jax.random.split(key, 1 + 2 * len(KERNEL_SIZES))
  x = jax.random.normal(keys[0], (N, input_dim, H, W), dtype=jnp.float32)

  weights, biases = [], []
  for i, k in enumerate(KERNEL_SIZES):
    fan_in = input_dim * k * k
    bound = 1.0 / (fan_in ** 0.5)
    w = jax.random.uniform(keys[1 + 2 * i], (k, k, input_dim, d),
                           minval=-bound, maxval=bound, dtype=jnp.float32)
    b = jax.random.uniform(keys[2 + 2 * i], (d,),
                           minval=-bound, maxval=bound, dtype=jnp.float32)
    weights.append(w)
    biases.append(b)

  out = jax.block_until_ready(conv_block(x, weights, biases))
  ref = jax.block_until_ready(reference_conv_block(x, weights, biases))

  assert out.shape == (N, output_dim, H, W), out.shape
  assert jnp.allclose(out, ref, rtol=1e-4, atol=1e-5), \
      float(jnp.max(jnp.abs(out - ref)))

  print("KERNEL_OK")
</pallas_src>

<mosaic_0001>
module attributes {stable_mosaic.version = 11 : i64} {
  func.func @_fused_conv_kernel(%arg0: i32, %arg1: memref<1x256x64xf32, #tpu.memory_space<vmem>>, %arg2: memref<64x32xf32, #tpu.memory_space<vmem>>, %arg3: memref<1x32xf32, #tpu.memory_space<vmem>>, %arg4: memref<1x256x32xf32, #tpu.memory_space<vmem>>) attributes {dimension_semantics = [#tpu.dimension_semantics<parallel>], iteration_bounds = array<i64: 2>, scalar_prefetch = 0 : i64, scratch_operands = 0 : i64, tpu.core_type = #tpu.core_type<tc>, window_params = [{transform_indices = @transform_0, window_bounds = array<i64: 1, 256, 64>}, {pipeline_mode = #tpu.pipeline_mode<synchronous>, transform_indices = @transform_1, window_bounds = array<i64: 64, 32>}, {pipeline_mode = #tpu.pipeline_mode<synchronous>, transform_indices = @transform_2, window_bounds = array<i64: 1, 32>}, {transform_indices = @transform_3, window_bounds = array<i64: 1, 256, 32>}]} {
    %c0 = arith.constant 0 : index
    %c0_0 = arith.constant 0 : index
    %c0_1 = arith.constant 0 : index
    %0 = vector.load %arg1[%c0, %c0_0, %c0_1] : memref<1x256x64xf32, #tpu.memory_space<vmem>>, vector<1x256x64xf32>
    %1 = vector.shape_cast %0 : vector<1x256x64xf32> to vector<256x64xf32>
    %c0_2 = arith.constant 0 : index
    %c0_3 = arith.constant 0 : index
    %2 = vector.load %arg2[%c0_2, %c0_3] : memref<64x32xf32, #tpu.memory_space<vmem>>, vector<64x32xf32>
    %cst = arith.constant dense<0.000000e+00> : vector<256x32xf32>
    %3 = tpu.matmul %1, %2, %cst {dimension_numbers = #tpu.dot_dimension_numbers<[1], [0], [0], [1], [0, 0, 1, 1], [], []>} : vector<256x64xf32>, vector<64x32xf32>, vector<256x32xf32> -> vector<256x32xf32>
    %c0_4 = arith.constant 0 : index
    %c0_5 = arith.constant 0 : index
    %4 = vector.load %arg3[%c0_4, %c0_5] : memref<1x32xf32, #tpu.memory_space<vmem>>, vector<1x32xf32>
    %5 = vector.broadcast %4 : vector<1x32xf32> to vector<256x32xf32>
    %6 = arith.addf %3, %5 : vector<256x32xf32>
    %c0_6 = arith.constant 0 : index
    %c0_7 = arith.constant 0 : index
    %c0_8 = arith.constant 0 : index
    %7 = vector.load %arg4[%c0_6, %c0_7, %c0_8] : memref<1x256x32xf32, #tpu.memory_space<vmem>>, vector<1x256x32xf32>
    %8 = vector.shape_cast %7 : vector<1x256x32xf32> to vector<256x32xf32>
    %9 = vector.shape_cast %6 : vector<256x32xf32> to vector<1x256x32xf32>
    tpu.vector_store %arg4[%c0_6, %c0_7, %c0_8], %9 {strides = array<i32>} : memref<1x256x32xf32, #tpu.memory_space<vmem>>, vector<1x256x32xf32>,
    return
  }
  func.func @transform_0(%arg0: i32) -> (i32, i32, i32) {
    %c0_i32 = arith.constant 0 : i32
    %c0_i32_0 = arith.constant 0 : i32
    %c0_i32_1 = arith.constant 0 : i32
    return %arg0, %c0_i32, %c0_i32_0 : i32, i32, i32
  }
  func.func @transform_1(%arg0: i32) -> (i32, i32) {
    %c0_i32 = arith.constant 0 : i32
    %c0_i32_0 = arith.constant 0 : i32
    %c0_i32_1 = arith.constant 0 : i32
    return %c0_i32, %c0_i32_0 : i32, i32
  }
  func.func @transform_2(%arg0: i32) -> (i32, i32) {
    %c0_i32 = arith.constant 0 : i32
    %c0_i32_0 = arith.constant 0 : i32
    %c0_i32_1 = arith.constant 0 : i32
    return %c0_i32, %c0_i32_0 : i32, i32
  }
  func.func @transform_3(%arg0: i32) -> (i32, i32, i32) {
    %c0_i32 = arith.constant 0 : i32
    %c0_i32_0 = arith.constant 0 : i32
    %c0_i32_1 = arith.constant 0 : i32
    return %arg0, %c0_i32, %c0_i32_0 : i32, i32, i32
  }
}

</mosaic_0001>

<bundles_post_ra>
// kernel: tpu_custom_call.1
= control target key start
LH: loop header
LB: loop body
LE: loop exit
PB: predicated region body
PF: predicated region fallthrough
CT: control target
= control target key end

     0   :  { %s838_s12 = smov 0   ;;  %s1055_s0 = inlined_call_operand.vmem [shape: f32[2,256,64], index: 0, kind: input, shape index: {}]   ;;  %s1056_s1 = inlined_call_operand.vmem [shape: f32[64,32], index: 1, kind: input, shape index: {}]   ;;  %s1057_s2 = inlined_call_operand.vmem [shape: f32[1,32], index: 2, kind: input, shape index: {}]   ;;  %s1058_s3 = inlined_call_operand.vmem [shape: f32[2,256,32], index: 3, kind: output, shape index: {}]  }
   0x1 LB: > { %s628_s13 = sadd.s32 4294967295, %s816_s12   ;;  %p632_p0 = scmp.ge.s32.totalorder %s816_s12, 1  ;;  %s816_s12 = sphi %s838_s12, %s13_s12  }
   0x2   : > { %p137_p1 = scmp.lt.s32.totalorder %s816_s12, 3 }
   0x4   : > { %p138_p2 = pnand %p632_p0, %p137_p1 }
   0x5   : > { %v203_v0 = vld [vmem:[%s1056_s1] sm:$0xff] (!%p138_p2)  ;;  %v204_v1 = vld [vmem:[%s1056_s1 + $0x8] sm:$0xff] (!%p138_p2)  ;;  %v205_v2 = vld [vmem:[%s1056_s1 + $0x10] sm:$0xff] (!%p138_p2)  ;;  %p161_p3 = scmp.lt.s32.totalorder (!%p138_p2), %s628_s13, 1  ;;  %vm218_vm0 = vcmask (!%p138_p2), 523264   ;;  %vm540_vm1 = vcmask (!%p138_p2), 261120  }
   0x6   : > { %141 = sbr.rel (%p138_p2) target bundleno = 269 (0x10d), region = 32  ;;  %v778_v3 = vpack.c.bf16 (!%p138_p2), %v204_v1, %v203_v0  ;;  %v206_v4 = vld [vmem:[%s1056_s1 + $0x18] sm:$0xff] (!%p138_p2)  ;;  %v207_v6 = vld [vmem:[%s1056_s1 + $0x20] sm:$0xff] (!%p138_p2)  ;;  %v208_v7 = vld [vmem:[%s1056_s1 + $0x28] sm:$0xff] (!%p138_p2) }
   0x7   : > { %v782_v5 = vpack.c.bf16 (!%p138_p2), %v206_v4, %v205_v2  ;;  %v786_v8 = vpack.c.bf16 (!%p138_p2), %v208_v7, %v207_v6  ;;  %v209_v9 = vld [vmem:[%s1056_s1 + $0x30] sm:$0xff] (!%p138_p2)  ;;  %v210_v10 = vld [vmem:[%s1056_s1 + $0x38] sm:$0xff] (!%p138_p2)  ;;  %v947_v44 = vld [vmem:[%s1057_s2] ss:$0 sm:$0xff] (!%p138_p2) }
   0x8   : > { %779 = vmatprep.subr.bf16.mxu0 (!%p138_p2), %v778_v3  ;;  %794 = vmatprep.subr.bf16.mxu1 (!%p138_p2), %v778_v3  ;;  %v790_v13 = vpack.c.bf16 (!%p138_p2), %v210_v10, %v209_v9 }
   0x9   : > { %781 = vmatpush3.bf16.msra.mxu0 (!%p138_p2), %v778_v3  ;;  %798 = vmatpush3.bf16.msra.mxu1 (!%p138_p2), %v778_v3 }
   0xa   : > { %783 = vmatprep.subr.bf16.mxu0 (!%p138_p2), %v782_v5  ;;  %795 = vmatprep.subr.bf16.mxu1 (!%p138_p2), %v782_v5 }
   0xd   : > { %s1060_s13 = smov (!%p161_p3, %s628_s13), 1  ;;  %785 = vmatpush3.bf16.msra.mxu0 %v782_v5  ;;  %799 = vmatpush3.bf16.msra.mxu1 %v782_v5 }
   0xe   : > { %s672_s26 = sshll.u32 %s1060_s13, 8  ;;  %787 = vmatprep.subr.bf16.mxu0 %v786_v8  ;;  %796 = vmatprep.subr.bf16.mxu1 %v786_v8 }
   0xf   : > { %s875_s4 = scalar_lea.vmem %s1055_s0, %s672_s26  ;;  %s954_s11 = scalar_lea.vmem %s1058_s3, %s672_s26 }
  0x10   : > { %v171_v11 = vld [vmem:[%s875_s4] sm:$0xff]  ;;  %v172_v14 = vld [vmem:[%s875_s4 + $0x8] sm:$0xff]  ;;  %v173_v16 = vld [vmem:[%s875_s4 + $0x10] sm:$0xff] }
  0x11   : > { %v187_v12 = vld [vmem:[%s875_s4 + $0x80] sm:$0xff]  ;;  %730 = vmatprep.mubr.msk.f32.mxu0 %vm218_vm0, %v171_v11  ;;  %789 = vmatpush3.bf16.msra.mxu0 %v786_v8  ;;  %v188_v15 = vld [vmem:[%s875_s4 + $0x88] sm:$0xff]  ;;  %v189_v17 = vld [vmem:[%s875_s4 + $0x90] sm:$0xff] }
  0x12   : > { %754 = vmatprep.mubr.msk.f32.mxu1 %vm218_vm0, %v187_v12  ;;  %800 = vmatpush3.bf16.msra.mxu1 %v786_v8  ;;  %v174_v18 = vld [vmem:[%s875_s4 + $0x18] sm:$0xff]  ;;  %v175_v20 = vld [vmem:[%s875_s4 + $0x20] sm:$0xff]  ;;  %v176_v22 = vld [vmem:[%s875_s4 + $0x28] sm:$0xff] }
  0x13   : > { %791 = vmatprep.subr.bf16.mxu0 %v790_v13  ;;  %797 = vmatprep.subr.bf16.mxu1 %v790_v13  ;;  %v190_v19 = vld [vmem:[%s875_s4 + $0x98] sm:$0xff]  ;;  %v191_v21 = vld [vmem:[%s875_s4 + $0xa0] sm:$0xff]  ;;  %v192_v23 = vld [vmem:[%s875_s4 + $0xa8] sm:$0xff] }
  0x14   : > { %v177_v24 = vld [vmem:[%s875_s4 + $0x30] sm:$0xff]  ;;  %v178_v26 = vld [vmem:[%s875_s4 + $0x38] sm:$0xff]  ;;  %v179_v28 = vld [vmem:[%s875_s4 + $0x40] sm:$0xff] }
  0x15   : > { %793 = vmatpush3.bf16.msra.mxu0 %v790_v13  ;;  %v193_v25 = vld [vmem:[%s875_s4 + $0xb0] sm:$0xff]  ;;  %v194_v27 = vld [vmem:[%s875_s4 + $0xb8] sm:$0xff]  ;;  %v195_v29 = vld [vmem:[%s875_s4 + $0xc0] sm:$0xff] }
  0x16   : > { %801 = vmatpush3.bf16.msra.mxu1 %v790_v13  ;;  %v180_v30 = vld [vmem:[%s875_s4 + $0x48] sm:$0xff]  ;;  %v181_v32 = vld [vmem:[%s875_s4 + $0x50] sm:$0xff]  ;;  %v182_v34 = vld [vmem:[%s875_s4 + $0x58] sm:$0xff] }
  0x17   : > { %v196_v31 = vld [vmem:[%s875_s4 + $0xc8] sm:$0xff]  ;;  %v197_v33 = vld [vmem:[%s875_s4 + $0xd0] sm:$0xff]  ;;  %v198_v35 = vld [vmem:[%s875_s4 + $0xd8] sm:$0xff] }
  0x18   : > { %731 = vmatmul.mubr.msk.f32.vlgmr.msra.gmra.mrb[0].mxu0 %vm218_vm0, %v172_v14  ;;  %v183_v36 = vld [vmem:[%s875_s4 + $0x60] sm:$0xff]  ;;  %v184_v38 = vld [vmem:[%s875_s4 + $0x68] sm:$0xff]  ;;  %v185_v40 = vld [vmem:[%s875_s4 + $0x70] sm:$0xff] }
  0x19   : > { %755 = vmatmul.mubr.msk.f32.vlgmr.msra.gmra.mrb[0].mxu1 %vm218_vm0, %v188_v15  ;;  %733 = vmatprep.mubr.msk.f32.mxu0 %vm218_vm0, %v173_v16  ;;  %v199_v37 = vld [vmem:[%s875_s4 + $0xe0] sm:$0xff]  ;;  %v200_v39 = vld [vmem:[%s875_s4 + $0xe8] sm:$0xff]  ;;  %v201_v41 = vld [vmem:[%s875_s4 + $0xf0] sm:$0xff] }
  0x1a   : > { %757 = vmatprep.mubr.msk.f32.mxu1 %vm218_vm0, %v189_v17  ;;  %v186_v42 = vld [vmem:[%s875_s4 + $0x78] sm:$0xff] }
  0x1b   : > { %v202_v43 = vld [vmem:[%s875_s4 + $0xf8] sm:$0xff] }
  0x1c   : > { %734 = vmatmul.mubr.msk.f32.gmra.mrb[2].mxu0 %vm218_vm0, %v174_v18 }
  0x1d   : > { %758 = vmatmul.mubr.msk.f32.gmra.mrb[2].mxu1 %vm218_vm0, %v190_v19  ;;  %736 = vmatprep.mubr.msk.f32.mxu0 %vm218_vm0, %v175_v20 }
  0x1e   : > { %760 = vmatprep.mubr.msk.f32.mxu1 %vm218_vm0, %v191_v21 }
  0x20   : > { %737 = vmatmul.mubr.msk.f32.gmra.mrb[4].mxu0 %vm218_vm0, %v176_v22 }
  0x21   : > { %761 = vmatmul.mubr.msk.f32.gmra.mrb[4].mxu1 %vm218_vm0, %v192_v23  ;;  %739 = vmatprep.mubr.msk.f32.mxu0 %vm218_vm0, %v177_v24 }
  0x22   : > { %763 = vmatprep.mubr.msk.f32.mxu1 %vm218_vm0, %v193_v25 }
  0x24   : > { %740 = vmatmul.mubr.msk.f32.gmra.mrb[6].mxu0 %vm218_vm0, %v178_v26 }
  0x25   : > { %764 = vmatmul.mubr.msk.f32.gmra.mrb[6].mxu1 %vm218_vm0, %v194_v27  ;;  %742 = vmatprep.mubr.msk.f32.mxu0 %vm218_vm0, %v179_v28 }
  0x26   : > { %766 = vmatprep.mubr.msk.f32.mxu1 %vm218_vm0, %v195_v29 }
  0x28   : > { %743 = vmatmul.mubr.msk.f32.gmra.mrb[8].mxu0 %vm218_vm0, %v180_v30 }
  0x29   : > { %767 = vmatmul.mubr.msk.f32.gmra.mrb[8].mxu1 %vm218_vm0, %v196_v31  ;;  %745 = vmatprep.mubr.msk.f32.mxu0 %vm218_vm0, %v181_v32 }
  0x2a   : > { %769 = vmatprep.mubr.msk.f32.mxu1 %vm218_vm0, %v197_v33 }
  0x2c   : > { %746 = vmatmul.mubr.msk.f32.gmra.mrb[10].mxu0 %vm218_vm0, %v182_v34 }
  0x2d   : > { %770 = vmatmul.mubr.msk.f32.gmra.mrb[10].mxu1 %vm218_vm0, %v198_v35  ;;  %748 = vmatprep.mubr.msk.f32.mxu0 %vm218_vm0, %v183_v36 }
  0x2e   : > { %772 = vmatprep.mubr.msk.f32.mxu1 %vm218_vm0, %v199_v37 }
  0x30   : > { %749 = vmatmul.mubr.msk.f32.gmra.mrb[12].mxu0 %vm218_vm0, %v184_v38 }
  0x31   : > { %773 = vmatmul.mubr.msk.f32.gmra.mrb[12].mxu1 %vm218_vm0, %v200_v39  ;;  %751 = vmatprep.mubr.msk.f32.mxu0 %vm218_vm0, %v185_v40 }
  0x32   : > { %775 = vmatprep.mubr.msk.f32.mxu1 %vm218_vm0, %v201_v41 }
  0x34   : > { %752 = vmatmul.mubr.msk.f32.gmra.mrb[14].mxu0 %vm218_vm0, %v186_v42 }
  0x35   : > { %776 = vmatmul.mubr.msk.f32.gmra.mrb[14].mxu1 %vm218_vm0, %v202_v43 }
  0xeb   : > { %v732_v45 = vpop.f32.mrb[0].mxu0 }
  0xec   : > { %v756_v46 = vpop.f32.mrb[0].mxu1  ;;  %v387_v47 = vadd.f32 %v732_v45, %v947_v44  ;;  %v381_v49 = vpop.f32.mrb[1].mxu0 }
  0xed   : > { %v467_v48 = vadd.f32 %v756_v46, %v947_v44  ;;  %v461_v50 = vpop.f32.mrb[1].mxu1  ;;  %v382_v51 = vadd.f32 %v947_v44, %v381_v49 }
  0xee   : > { %v462_v52 = vadd.f32 %v947_v44, %v461_v50  ;;  %542 = vst.msk [vmem:[%s954_s11 + $0x8] sm:$0xff] %vm540_vm1, %v387_v47 }
  0xef   : > { %558 = vst.msk [vmem:[%s954_s11 + $0x88] sm:$0xff] %vm540_vm1, %v467_v48  ;;  %541 = vst.msk [vmem:[%s954_s11] sm:$0xff] %vm540_vm1, %v382_v51  ;;  %v735_v53 = vpop.f32.mrb[2].mxu0 }
  0xf0   : > { %557 = vst.msk [vmem:[%s954_s11 + $0x80] sm:$0xff] %vm540_vm1, %v462_v52  ;;  %v759_v54 = vpop.f32.mrb[2].mxu1  ;;  %v397_v55 = vadd.f32 %v735_v53, %v947_v44  ;;  %v391_v57 = vpop.f32.mrb[3].mxu0 }
  0xf1   : > { %v477_v56 = vadd.f32 %v759_v54, %v947_v44  ;;  %v471_v58 = vpop.f32.mrb[3].mxu1  ;;  %v392_v59 = vadd.f32 %v947_v44, %v391_v57 }
  0xf2   : > { %v472_v60 = vadd.f32 %v947_v44, %v471_v58  ;;  %544 = vst.msk [vmem:[%s954_s11 + $0x18] sm:$0xff] %vm540_vm1, %v397_v55 }
  0xf3   : > { %560 = vst.msk [vmem:[%s954_s11 + $0x98] sm:$0xff] %vm540_vm1, %v477_v56  ;;  %543 = vst.msk [vmem:[%s954_s11 + $0x10] sm:$0xff] %vm540_vm1, %v392_v59  ;;  %v738_v61 = vpop.f32.mrb[4].mxu0 }
  0xf4   : > { %559 = vst.msk [vmem:[%s954_s11 + $0x90] sm:$0xff] %vm540_vm1, %v472_v60  ;;  %v762_v62 = vpop.f32.mrb[4].mxu1  ;;  %v407_v63 = vadd.f32 %v738_v61, %v947_v44  ;;  %v401_v1 = vpop.f32.mrb[5].mxu0 }
  0xf5   : > { %v487_v0 = vadd.f32 %v762_v62, %v947_v44  ;;  %v481_v2 = vpop.f32.mrb[5].mxu1  ;;  %v402_v3 = vadd.f32 %v947_v44, %v401_v1 }
  0xf6   : > { %v482_v4 = vadd.f32 %v947_v44, %v481_v2  ;;  %546 = vst.msk [vmem:[%s954_s11 + $0x28] sm:$0xff] %vm540_vm1, %v407_v63 }
  0xf7   : > { %562 = vst.msk [vmem:[%s954_s11 + $0xa8] sm:$0xff] %vm540_vm1, %v487_v0  ;;  %545 = vst.msk [vmem:[%s954_s11 + $0x20] sm:$0xff] %vm540_vm1, %v402_v3  ;;  %v741_v5 = vpop.f32.mrb[6].mxu0 }
  0xf8   : > { %561 = vst.msk [vmem:[%s954_s11 + $0xa0] sm:$0xff] %vm540_vm1, %v482_v4  ;;  %v765_v6 = vpop.f32.mrb[6].mxu1  ;;  %v417_v7 = vadd.f32 %v741_v5, %v947_v44  ;;  %v411_v9 = vpop.f32.mrb[7].mxu0 }
  0xf9   : > { %v497_v8 = vadd.f32 %v765_v6, %v947_v44  ;;  %v491_v10 = vpop.f32.mrb[7].mxu1  ;;  %v412_v11 = vadd.f32 %v947_v44, %v411_v9 }
  0xfa   : > { %v492_v12 = vadd.f32 %v947_v44, %v491_v10  ;;  %548 = vst.msk [vmem:[%s954_s11 + $0x38] sm:$0xff] %vm540_vm1, %v417_v7 }
  0xfb   : > { %564 = vst.msk [vmem:[%s954_s11 + $0xb8] sm:$0xff] %vm540_vm1, %v497_v8  ;;  %547 = vst.msk [vmem:[%s954_s11 + $0x30] sm:$0xff] %vm540_vm1, %v412_v11  ;;  %v744_v13 = vpop.f32.mrb[8].mxu0 }
  0xfc   : > { %563 = vst.msk [vmem:[%s954_s11 + $0xb0] sm:$0xff] %vm540_vm1, %v492_v12  ;;  %v768_v14 = vpop.f32.mrb[8].mxu1  ;;  %v427_v15 = vadd.f32 %v744_v13, %v947_v44  ;;  %v421_v17 = vpop.f32.mrb[9].mxu0 }
  0xfd   : > { %v507_v16 = vadd.f32 %v768_v14, %v947_v44  ;;  %v501_v18 = vpop.f32.mrb[9].mxu1  ;;  %v422_v19 = vadd.f32 %v947_v44, %v421_v17 }
  0xfe   : > { %v502_v20 = vadd.f32 %v947_v44, %v501_v18  ;;  %550 = vst.msk [vmem:[%s954_s11 + $0x48] sm:$0xff] %vm540_vm1, %v427_v15 }
  0xff   : > { %566 = vst.msk [vmem:[%s954_s11 + $0xc8] sm:$0xff] %vm540_vm1, %v507_v16  ;;  %549 = vst.msk [vmem:[%s954_s11 + $0x40] sm:$0xff] %vm540_vm1, %v422_v19  ;;  %v747_v21 = vpop.f32.mrb[10].mxu0 }
 0x100   : > { %565 = vst.msk [vmem:[%s954_s11 + $0xc0] sm:$0xff] %vm540_vm1, %v502_v20  ;;  %v771_v22 = vpop.f32.mrb[10].mxu1  ;;  %v437_v23 = vadd.f32 %v747_v21, %v947_v44  ;;  %v431_v25 = vpop.f32.mrb[11].mxu0 }
 0x101   : > { %v517_v24 = vadd.f32 %v771_v22, %v947_v44  ;;  %v511_v26 = vpop.f32.mrb[11].mxu1  ;;  %v432_v27 = vadd.f32 %v947_v44, %v431_v25 }
 0x102   : > { %v512_v28 = vadd.f32 %v947_v44, %v511_v26  ;;  %552 = vst.msk [vmem:[%s954_s11 + $0x58] sm:$0xff] %vm540_vm1, %v437_v23 }
 0x103   : > { %568 = vst.msk [vmem:[%s954_s11 + $0xd8] sm:$0xff] %vm540_vm1, %v517_v24  ;;  %551 = vst.msk [vmem:[%s954_s11 + $0x50] sm:$0xff] %vm540_vm1, %v432_v27  ;;  %v750_v29 = vpop.f32.mrb[12].mxu0 }
 0x104   : > { %567 = vst.msk [vmem:[%s954_s11 + $0xd0] sm:$0xff] %vm540_vm1, %v512_v28  ;;  %v774_v30 = vpop.f32.mrb[12].mxu1  ;;  %v447_v31 = vadd.f32 %v750_v29, %v947_v44  ;;  %v441_v33 = vpop.f32.mrb[13].mxu0 }
 0x105   : > { %v527_v32 = vadd.f32 %v774_v30, %v947_v44  ;;  %v521_v34 = vpop.f32.mrb[13].mxu1  ;;  %v442_v35 = vadd.f32 %v947_v44, %v441_v33 }
 0x106   : > { %v522_v36 = vadd.f32 %v947_v44, %v521_v34  ;;  %554 = vst.msk [vmem:[%s954_s11 + $0x68] sm:$0xff] %vm540_vm1, %v447_v31 }
 0x107   : > { %570 = vst.msk [vmem:[%s954_s11 + $0xe8] sm:$0xff] %vm540_vm1, %v527_v32  ;;  %553 = vst.msk [vmem:[%s954_s11 + $0x60] sm:$0xff] %vm540_vm1, %v442_v35  ;;  %v753_v37 = vpop.f32.mrb[14].mxu0 }
 0x108   : > { %569 = vst.msk [vmem:[%s954_s11 + $0xe0] sm:$0xff] %vm540_vm1, %v522_v36  ;;  %v777_v38 = vpop.f32.mrb[14].mxu1  ;;  %v457_v39 = vadd.f32 %v753_v37, %v947_v44  ;;  %v451_v41 = vpop.f32.mrb[15].mxu0 }
 0x109   : > { %v537_v40 = vadd.f32 %v777_v38, %v947_v44  ;;  %v531_v42 = vpop.f32.mrb[15].mxu1  ;;  %v452_v43 = vadd.f32 %v947_v44, %v451_v41 }
 0x10a   : > { %v532_v45 = vadd.f32 %v947_v44, %v531_v42  ;;  %556 = vst.msk [vmem:[%s954_s11 + $0x78] sm:$0xff] %vm540_vm1, %v457_v39 }
 0x10b   : > { %572 = vst.msk [vmem:[%s954_s11 + $0xf8] sm:$0xff] %vm540_vm1, %v537_v40  ;;  %555 = vst.msk [vmem:[%s954_s11 + $0x70] sm:$0xff] %vm540_vm1, %v452_v43 }
 0x10c   : > { %571 = vst.msk [vmem:[%s954_s11 + $0xf0] sm:$0xff] %vm540_vm1, %v532_v45 }
 0x10d PF: > { %s13_s12 = sadd.s32 1, %s816_s12  }
 0x10e   : > { %p10_p4 = scmp.ge.s32.totalorder %s13_s12, 4  }
 0x110   :  { %12 = sbr.rel (!%p10_p4) target bundleno = 1 (0x1), region = 62 }

</bundles_post_ra>
